<compile_context>
chip_gen: v7x
topology: tpu7x:2x2x1
jax: 0.10.0
libtpu: 0.0.40
codegen_flags: <defaults>
</compile_context>

<pallas_src>
import functools

import jax
import jax.numpy as jnp
from jax.experimental import pallas as pl
from jax.experimental.pallas import tpu as pltpu

_NEG_INF = -1e30                  # padded-logit bias so log_softmax ignores pad lanes
_LANE = 128                       # lane width: pad feature dims to multiples of this
_N_ALIGN = 512                    # pad node count to a multiple of this (keeps TK>=512)
_VMEM_LIMIT = 48 * 1024 * 1024    # <= v7x's 64 MiB physical; ample headroom elsewhere


def _round_up(x, m):
    return ((x + m - 1) // m) * m


def _pick_tile(n, candidates):
    """Largest candidate that divides n (n is always a multiple of the smallest)."""
    for cand in candidates:
        if cand <= n and n % cand == 0:
            return cand
    return n


def _pick_row_tile(n_pad):
    """Row tile: prefer an even row-grid (v7x has 2 TensorCores), then the largest."""
    for tm in (1024, 512):
        if n_pad % tm == 0 and (n_pad // tm) % 2 == 0:
            return tm
    for tm in (1024, 512):
        if n_pad % tm == 0:
            return tm
    return n_pad


# --------------------------- kernel 1: feature transform -------------------------


def _feat_transform_kernel(x_ref, w_ref, b_ref, yl_ref, yr_ref, acc_ref):
    """Y = X @ [W_l | W_r] + b, emitted as Y_l (bf16, streamed by the aggregator's
    K loop) and Y_r (f32, per-node root term incl. bias).  Grid = (row, K) with a
    resident f32 accumulator; output written on the last K step only."""
    k = pl.program_id(1)

    @pl.when(k == 0)
    def _init():
        acc_ref[...] = jnp.zeros_like(acc_ref)

    acc_ref[...] += jnp.dot(x_ref[...], w_ref[...],
                            preferred_element_type=jnp.float32)

    @pl.when(k == pl.num_programs(1) - 1)
    def _finish():
        y = acc_ref[...] + b_ref[...]                 # f32 bias broadcast
        h_pad = yl_ref.shape[1]
        yl_ref[...] = y[:, :h_pad].astype(yl_ref.dtype)   # lin_l input, bf16
        yr_ref[...] = y[:, h_pad:].astype(yr_ref.dtype)   # root term + bias, f32


def feature_transform(x_pad, w_stacked, b_stacked):
    """x_pad [N_pad, F_pad] bf16, w_stacked [F_pad, 2*H_pad] bf16, b [1, 2*H_pad] f32."""
    n_pad, f_pad = x_pad.shape
    two_h = w_stacked.shape[1]
    h_pad = two_h // 2
    tm = _pick_tile(n_pad, (512, 256))
    tk = _pick_tile(f_pad, (1024, 512, 256, 128))
    grid = (n_pad // tm, f_pad // tk)

    return pl.pallas_call(
        _feat_transform_kernel,
        out_shape=(jax.ShapeDtypeStruct((n_pad, h_pad), jnp.bfloat16),
                   jax.ShapeDtypeStruct((n_pad, h_pad), jnp.float32)),
        grid_spec=pltpu.PrefetchScalarGridSpec(
            num_scalar_prefetch=0,
            grid=grid,
            in_specs=[
                pl.BlockSpec((tm, tk), lambda i, k: (i, k)),        # X tile
                pl.BlockSpec((tk, two_h), lambda i, k: (k, 0)),     # [W_l | W_r]
                pl.BlockSpec((1, two_h), lambda i, k: (0, 0)),      # stacked bias
            ],
            out_specs=[
                pl.BlockSpec((tm, h_pad), lambda i, k: (i, 0)),     # Y_l
                pl.BlockSpec((tm, h_pad), lambda i, k: (i, 0)),     # Y_r
            ],
            scratch_shapes=[pltpu.VMEM((tm, two_h), jnp.float32)],
        ),
        compiler_params=pltpu.CompilerParams(
            dimension_semantics=("parallel", "arbitrary"),
            vmem_limit_bytes=_VMEM_LIMIT,
        ),
    )(x_pad, w_stacked, b_stacked)


# ----------------------------- kernel 2: aggregation -----------------------------


def _aggregate_kernel(adj_ref, yl_ref, yr_ref, invdeg_ref, o_ref, acc_ref,
                      *, activation):
    """out = act( (adj @ Y_l) * inv_deg + Y_r ).

    adj is streamed as int8 edge counts (1 byte/elem in HBM) and upcast to bf16 in
    VMEM for the MXU; the exact 1/deg mean normalization is an f32 row scale in the
    epilogue.  Grid = (row tiles, contraction tiles), K-last accumulator pattern.
    """
    k = pl.program_id(1)

    @pl.when(k == 0)
    def _init():
        acc_ref[...] = jnp.zeros_like(acc_ref)

    a_bf16 = adj_ref[...].astype(jnp.float32).astype(jnp.bfloat16)  # small ints: exact
    acc_ref[...] += jnp.dot(a_bf16, yl_ref[...],
                            preferred_element_type=jnp.float32)

    @pl.when(k == pl.num_programs(1) - 1)
    def _finish():
        h = acc_ref[...] * invdeg_ref[...] + yr_ref[...]            # f32 epilogue
        if activation == "relu":
            h = jnp.maximum(h, 0.0)
        elif activation == "log_softmax":
            m = jnp.max(h, axis=-1, keepdims=True)
            s = h - m
            lse = jnp.log(jnp.sum(jnp.exp(s), axis=-1, keepdims=True))
            h = s - lse
        o_ref[...] = h.astype(o_ref.dtype)


def aggregate(adj_i8, y_l, y_r, inv_deg, activation, out_dtype):
    n_pad = adj_i8.shape[0]
    h_pad = y_l.shape[1]
    tm = _pick_row_tile(n_pad)
    tk = _pick_tile(n_pad, (2048, 1024, 512))
    grid = (n_pad // tm, n_pad // tk)

    kernel = functools.partial(_aggregate_kernel, activation=activation)
    return pl.pallas_call(
        kernel,
        out_shape=jax.ShapeDtypeStruct((n_pad, h_pad), out_dtype),
        grid_spec=pltpu.PrefetchScalarGridSpec(
            num_scalar_prefetch=0,
            grid=grid,
            in_specs=[
                pl.BlockSpec((tm, tk), lambda i, k: (i, k)),        # adj (int8)
                pl.BlockSpec((tk, h_pad), lambda i, k: (k, 0)),     # Y_l slab (bf16)
                pl.BlockSpec((tm, h_pad), lambda i, k: (i, 0)),     # Y_r rows (f32)
                pl.BlockSpec((tm, 1), lambda i, k: (i, 0)),         # 1/deg (f32)
            ],
            out_specs=pl.BlockSpec((tm, h_pad), lambda i, k: (i, 0)),
            scratch_shapes=[pltpu.VMEM((tm, h_pad), jnp.float32)],
        ),
        compiler_params=pltpu.CompilerParams(
            dimension_semantics=("parallel", "arbitrary"),
            vmem_limit_bytes=_VMEM_LIMIT,
        ),
    )(adj_i8, y_l, y_r, inv_deg)


def sage_conv(x_pad, adj_i8, inv_deg, w_stacked, b_stacked, activation, out_dtype):
    """One SAGEConv layer = feature-transform kernel + aggregation kernel."""
    y_l, y_r = feature_transform(x_pad, w_stacked, b_stacked)
    return aggregate(adj_i8, y_l, y_r, inv_deg, activation, out_dtype)


# ----------------------------------- model ---------------------------------------


class GraphSAGEPallas:
    """Deterministically-initialized GraphSAGE forward using Pallas kernels."""

    def __init__(self, in_channels, hidden_channels, out_channels, key):
        self.in_channels = in_channels
        self.hidden_channels = hidden_channels
        self.out_channels = out_channels

        k = jax.random.split(key, 4)

        def glorot(rng, fan_in, fan_out):
            limit = jnp.sqrt(6.0 / (fan_in + fan_out))
            return jax.random.uniform(rng, (fan_in, fan_out), jnp.float32,
                                      -limit, limit)

        # Raw f32 parameters (reference semantics; conv lin_r has no bias in PyG).
        self.w1_l = glorot(k[0], in_channels, hidden_channels)
        self.w1_r = glorot(k[1], in_channels, hidden_channels)
        self.b1 = jnp.zeros((1, hidden_channels), jnp.float32)
        self.w2_l = glorot(k[2], hidden_channels, out_channels)
        self.w2_r = glorot(k[3], hidden_channels, out_channels)
        self.b2 = jnp.zeros((1, out_channels), jnp.float32)

        # Lane-dense padded feature sizes (multiples of 128).
        self.fin_p = _round_up(in_channels, _LANE)
        self.hid_p = _round_up(hidden_channels, _LANE)
        self.out_p = _round_up(out_channels, _LANE)

        def pad2(w, rows, cols):
            return jnp.pad(w, ((0, rows - w.shape[0]), (0, cols - w.shape[1])))

        # Column-stacked bf16 weights [W_l | W_r] -> one MXU matmul per node block.
        self.w1 = jnp.concatenate(
            [pad2(self.w1_l, self.fin_p, self.hid_p),
             pad2(self.w1_r, self.fin_p, self.hid_p)], axis=1).astype(jnp.bfloat16)
        self.w2 = jnp.concatenate(
            [pad2(self.w2_l, self.hid_p, self.out_p),
             pad2(self.w2_r, self.hid_p, self.out_p)], axis=1).astype(jnp.bfloat16)

        # Stacked f32 biases: l-half zero; r-half carries the real bias.  Layer-2
        # r-half pad lanes get -1e30 so the in-kernel log_softmax ignores them.
        b1_r = jnp.pad(self.b1, ((0, 0), (0, self.hid_p - hidden_channels)))
        self.b1_pad = jnp.concatenate(
            [jnp.zeros((1, self.hid_p), jnp.float32), b1_r], axis=1)
        b2_r = jnp.pad(self.b2, ((0, 0), (0, self.out_p - out_channels)),
                       constant_values=_NEG_INF)
        self.b2_pad = jnp.concatenate(
            [jnp.zeros((1, self.out_p), jnp.float32), b2_r], axis=1)

    def build_graph(self, edge_index, num_nodes):
        """Padded int8 edge-count adjacency + f32 inverse in-degree.

        adj[i, j] = #edges j -> i (int8, 1 byte/elem in HBM); inv_deg[i] = 1/in_deg(i)
        with zero rows contributing nothing (PyG scatter-mean semantics).  Padded
        rows/cols are zero.  Cache this when the graph is static across forwards.
        """
        n_pad = _round_up(num_nodes, _N_ALIGN)
        src, dst = edge_index[0], edge_index[1]
        adj = jnp.zeros((n_pad, n_pad), jnp.int32).at[dst, src].add(1)
        deg = jnp.sum(adj, axis=1, keepdims=True).astype(jnp.float32)
        inv_deg = 1.0 / jnp.maximum(deg, 1.0)
        # NOTE: int8 is exact for up to 127 parallel edges between the same pair.
        return adj.astype(jnp.int8), inv_deg

    def __call__(self, x, edge_index, graph=None):
        n = x.shape[0]
        n_pad = _round_up(n, _N_ALIGN)
        if graph is None:
            graph = self.build_graph(edge_index, n)
        adj_i8, inv_deg = graph
        x_pad = jnp.pad(
            x, ((0, n_pad - n), (0, self.fin_p - self.in_channels))
        ).astype(jnp.bfloat16)
        # Layer 1 output stays bf16 (halves HBM traffic for the intermediate).
        h = sage_conv(x_pad, adj_i8, inv_deg, self.w1, self.b1_pad,
                      "relu", jnp.bfloat16)
        out = sage_conv(h, adj_i8, inv_deg, self.w2, self.b2_pad,
                        "log_softmax", jnp.float32)
        return out[:n, :self.out_channels]


# ----------------------------------- references ----------------------------------


def _dense_graph_f32(edge_index, n):
    src, dst = edge_index[0], edge_index[1]
    adj = jnp.zeros((n, n), jnp.float32).at[dst, src].add(1.0)
    deg = jnp.maximum(jnp.sum(adj, axis=1, keepdims=True), 1.0)
    return adj, 1.0 / deg


def _reference_forward_f32(model, x, edge_index):
    """Pure-f32 JAX reference (exact PyG SAGEConv mean-aggregation semantics)."""
    n = x.shape[0]
    adj, inv_deg = _dense_graph_f32(edge_index, n)
    a = adj * inv_deg
    h = a @ x @ model.w1_l + x @ model.w1_r + model.b1
    h = jnp.maximum(h, 0.0)
    o = a @ h @ model.w2_l + h @ model.w2_r + model.b2
    return jax.nn.log_softmax(o, axis=1)


def _reference_forward_matched(model, x, edge_index):
    """JAX reference replicating the kernel's re-associated bf16/f32 numerics."""
    n = x.shape[0]
    adj, inv_deg = _dense_graph_f32(edge_index, n)
    adj_b = adj.astype(jnp.bfloat16)

    def layer(xb, wl, wr, b, act):
        yl = jnp.dot(xb, wl.astype(jnp.bfloat16),
                     preferred_element_type=jnp.float32).astype(jnp.bfloat16)
        yr = jnp.dot(xb, wr.astype(jnp.bfloat16),
                     preferred_element_type=jnp.float32) + b
        h = jnp.dot(adj_b, yl, preferred_element_type=jnp.float32) * inv_deg + yr
        if act == "relu":
            return jnp.maximum(h, 0.0)
        return jax.nn.log_softmax(h, axis=1)

    xb = x.astype(jnp.bfloat16)
    h = layer(xb, model.w1_l, model.w1_r, model.b1, "relu").astype(jnp.bfloat16)
    return layer(h, model.w2_l, model.w2_r, model.b2, "log_softmax")


if __name__ == "__main__":
    key = jax.random.PRNGKey(0)
    k_x, k_params = jax.random.split(key)

    num_nodes = 16
    in_channels = 8
    hidden_channels = 32
    out_channels = 4

    # Deterministic node features [N, F_in].
    x = jax.random.normal(k_x, (num_nodes, in_channels), jnp.float32)

    # Deterministic small graph: undirected ring + a few chords, as [2, E].
    src_list, dst_list = [], []
    for i in range(num_nodes):
        j = (i + 1) % num_nodes
        src_list += [i, j]
        dst_list += [j, i]
    for (i, j) in [(0, 8), (3, 11), (5, 13)]:
        src_list += [i, j]
        dst_list += [j, i]
    edge_index = jnp.array([src_list, dst_list], dtype=jnp.int32)

    model = GraphSAGEPallas(in_channels, hidden_channels, out_channels, k_params)

    # Static graph: build (and cache) the int8 adjacency + 1/deg once, outside the call.
    graph = model.build_graph(edge_index, num_nodes)

    out = model(x, edge_index, graph=graph)
    out = jax.block_until_ready(out)
    assert out.shape == (num_nodes, out_channels)

    # Tight check vs a reference that mirrors the kernel's bf16/f32 numerics.
    ref_matched = _reference_forward_matched(model, x, edge_index)
    assert jnp.allclose(out, ref_matched, atol=2e-2, rtol=2e-2), (
        float(jnp.max(jnp.abs(out - ref_matched))))

    # Loose check vs the pure-f32 PyTorch-equivalent semantics (bf16 MXU rounding).
    ref_f32 = _reference_forward_f32(model, x, edge_index)
    assert jnp.allclose(out, ref_f32, atol=1e-1, rtol=1e-1), (
        float(jnp.max(jnp.abs(out - ref_f32))))

    print("KERNEL_OK")
</pallas_src>

<mosaic_0001>
module attributes {stable_mosaic.version = 11 : i64} {
  func.func @_feat_transform_kernel(%arg0: i32, %arg1: i32, %arg2: memref<512x128xbf16, #tpu.memory_space<vmem>>, %arg3: memref<128x256xbf16, #tpu.memory_space<vmem>>, %arg4: memref<1x256xf32, #tpu.memory_space<vmem>>, %arg5: memref<512x128xbf16, #tpu.memory_space<vmem>>, %arg6: memref<512x128xf32, #tpu.memory_space<vmem>>, %arg7: memref<512x256xf32, #tpu.memory_space<vmem>>) attributes {dimension_semantics = [#tpu.dimension_semantics<parallel>, #tpu.dimension_semantics<arbitrary>], iteration_bounds = array<i64: 1, 1>, scalar_prefetch = 0 : i64, scratch_operands = 1 : i64, tpu.core_type = #tpu.core_type<tc>, window_params = [{transform_indices = @transform_0, window_bounds = array<i64: 512, 128>}, {transform_indices = @transform_1, window_bounds = array<i64: 128, 256>}, {pipeline_mode = #tpu.pipeline_mode<synchronous>, transform_indices = @transform_2, window_bounds = array<i64: 1, 256>}, {transform_indices = @transform_3, window_bounds = array<i64: 512, 128>}, {transform_indices = @transform_4, window_bounds = array<i64: 512, 128>}]} {
    %c0_i32 = arith.constant 0 : i32
    %0 = arith.cmpi eq, %arg1, %c0_i32 : i32
    %1 = arith.extui %0 : i1 to i32
    %c0_i32_0 = arith.constant 0 : i32
    %2 = arith.cmpi ne, %1, %c0_i32_0 : i32
    scf.if %2 {
      %cst_10 = arith.constant 0.000000e+00 : f32
      %12 = vector.broadcast %cst_10 : f32 to vector<512x256xf32>
      %c0_11 = arith.constant 0 : index
      %c0_12 = arith.constant 0 : index
      %13 = vector.load %arg7[%c0_11, %c0_12] : memref<512x256xf32, #tpu.memory_space<vmem>>, vector<512x256xf32>
      tpu.vector_store %arg7[%c0_11, %c0_12], %12 {strides = array<i32>} : memref<512x256xf32, #tpu.memory_space<vmem>>, vector<512x256xf32>,
    } else {
    }
    %c0 = arith.constant 0 : index
    %c0_1 = arith.constant 0 : index
    %3 = vector.load %arg7[%c0, %c0_1] : memref<512x256xf32, #tpu.memory_space<vmem>>, vector<512x256xf32>
    %c0_2 = arith.constant 0 : index
    %c0_3 = arith.constant 0 : index
    %4 = vector.load %arg2[%c0_2, %c0_3] : memref<512x128xbf16, #tpu.memory_space<vmem>>, vector<512x128xbf16>
    %c0_4 = arith.constant 0 : index
    %c0_5 = arith.constant 0 : index
    %5 = vector.load %arg3[%c0_4, %c0_5] : memref<128x256xbf16, #tpu.memory_space<vmem>>, vector<128x256xbf16>
    %cst = arith.constant dense<0.000000e+00> : vector<512x256xf32>
    %6 = tpu.matmul %4, %5, %cst {dimension_numbers = #tpu.dot_dimension_numbers<[1], [0], [0], [1], [0, 0, 1, 1], [], []>} : vector<512x128xbf16>, vector<128x256xbf16>, vector<512x256xf32> -> vector<512x256xf32>
    %7 = arith.addf %3, %6 : vector<512x256xf32>
    %c0_6 = arith.constant 0 : index
    %c0_7 = arith.constant 0 : index
    %8 = vector.load %arg7[%c0_6, %c0_7] : memref<512x256xf32, #tpu.memory_space<vmem>>, vector<512x256xf32>
    tpu.vector_store %arg7[%c0_6, %c0_7], %7 {strides = array<i32>} : memref<512x256xf32, #tpu.memory_space<vmem>>, vector<512x256xf32>,
    %c0_i32_8 = arith.constant 0 : i32
    %9 = arith.cmpi eq, %arg1, %c0_i32_8 : i32
    %10 = arith.extui %9 : i1 to i32
    %c0_i32_9 = arith.constant 0 : i32
    %11 = arith.cmpi ne, %10, %c0_i32_9 : i32
    scf.if %11 {
      %c0_10 = arith.constant 0 : index
      %c0_11 = arith.constant 0 : index
      %12 = vector.load %arg7[%c0_10, %c0_11] : memref<512x256xf32, #tpu.memory_space<vmem>>, vector<512x256xf32>
      %c0_12 = arith.constant 0 : index
      %c0_13 = arith.constant 0 : index
      %13 = vector.load %arg4[%c0_12, %c0_13] : memref<1x256xf32, #tpu.memory_space<vmem>>, vector<1x256xf32>
      %14 = vector.broadcast %13 : vector<1x256xf32> to vector<512x256xf32>
      %15 = arith.addf %12, %14 : vector<512x256xf32>
      %16 = vector.extract_strided_slice %15 {offsets = [0, 0], sizes = [512, 128], strides = [1, 1]} : vector<512x256xf32> to vector<512x128xf32>
      %17 = arith.truncf %16 : vector<512x128xf32> to vector<512x128xbf16>
      %c0_14 = arith.constant 0 : index
      %c0_15 = arith.constant 0 : index
      %18 = vector.load %arg5[%c0_14, %c0_15] : memref<512x128xbf16, #tpu.memory_space<vmem>>, vector<512x128xbf16>
      tpu.vector_store %arg5[%c0_14, %c0_15], %17 {strides = array<i32>} : memref<512x128xbf16, #tpu.memory_space<vmem>>, vector<512x128xbf16>,
      %19 = vector.extract_strided_slice %15 {offsets = [0, 128], sizes = [512, 128], strides = [1, 1]} : vector<512x256xf32> to vector<512x128xf32>
      %c0_16 = arith.constant 0 : index
      %c0_17 = arith.constant 0 : index
      %20 = vector.load %arg6[%c0_16, %c0_17] : memref<512x128xf32, #tpu.memory_space<vmem>>, vector<512x128xf32>
      tpu.vector_store %arg6[%c0_16, %c0_17], %19 {strides = array<i32>} : memref<512x128xf32, #tpu.memory_space<vmem>>, vector<512x128xf32>,
    } else {
    }
    return
  }
  func.func @transform_0(%arg0: i32, %arg1: i32) -> (i32, i32) {
    %c0_i32 = arith.constant 0 : i32
    return %arg0, %arg1 : i32, i32
  }
  func.func @transform_1(%arg0: i32, %arg1: i32) -> (i32, i32) {
    %c0_i32 = arith.constant 0 : i32
    %c0_i32_0 = arith.constant 0 : i32
    return %arg1, %c0_i32 : i32, i32
  }
  func.func @transform_2(%arg0: i32, %arg1: i32) -> (i32, i32) {
    %c0_i32 = arith.constant 0 : i32
    %c0_i32_0 = arith.constant 0 : i32
    %c0_i32_1 = arith.constant 0 : i32
    return %c0_i32, %c0_i32_0 : i32, i32
  }
  func.func @transform_3(%arg0: i32, %arg1: i32) -> (i32, i32) {
    %c0_i32 = arith.constant 0 : i32
    %c0_i32_0 = arith.constant 0 : i32
    return %arg0, %c0_i32 : i32, i32
  }
  func.func @transform_4(%arg0: i32, %arg1: i32) -> (i32, i32) {
    %c0_i32 = arith.constant 0 : i32
    %c0_i32_0 = arith.constant 0 : i32
    return %arg0, %c0_i32 : i32, i32
  }
}

</mosaic_0001>

<bundles_post_ra>
// kernel: tpu_custom_call.1
= control target key start
LH: loop header
LB: loop body
LE: loop exit
PB: predicated region body
PF: predicated region fallthrough
CT: control target
= control target key end

     0   :  { %10 = vsyncpa [#allocation4], 0  ;;  %s2769_s0 = inlined_call_operand.hbm [shape: bf16[512,128], index: 0, kind: input, shape index: {}]   ;;  %s2770_s1 = inlined_call_operand.hbm [shape: bf16[128,256], index: 1, kind: input, shape index: {}]   ;;  %s2771_s2 = inlined_call_operand.vmem [shape: f32[1,256], index: 2, kind: input, shape index: {}]   ;;  %s2772_s3 = inlined_call_operand.hbm [shape: bf16[512,128], index: 3, kind: output, shape index: {0}]   ;;  %s2773_s4 = inlined_call_operand.hbm [shape: f32[512,128], index: 4, kind: output, shape index: {1}]  }
   0x1   :  { %11 = vsyncpa [#allocation7], 0 }
   0x2   :  { %12 = vsyncpa [#allocation5], 0 }
   0x3   :  { %13 = vsyncpa [#allocation10], 0  ;;  %s2501_s15 = smov [#allocation3]   ;;  %s2405_s19 = scalar_lea.hbm %s2769_s0, 4096 }
   0x4   :  { %s19_s16 = sshll.u32 %s2501_s15, 4  ;;  %p2406_p0 = scmp.ne.s32.totalorder %s2769_s0, %s2405_s19  ;;  %s20_s16 = int_to_ptr.vmem [resolvable:$true] %s19_s16 }
   0x5   :  { %p2409_p1 = scmp.lt.u32.totalorder %s2405_s19, %s2769_s0 }
   0x7   :  { %p2411_p2 = pnand %p2409_p1, %p2406_p0 }
   0x9   :  { %2414 = shalt.err (!%p2411_p2)
}
   0xa   :  { %s2415_s24 = scalar_lea.vmem %s20_s16, 4096  ;;  %p2420_p4 = scmp.lt.s32.totalorder %s20_s16, %s20_s16 }
   0xb   :  { %p2416_p3 = scmp.ne.s32.totalorder %s20_s16, %s2415_s24  ;;  %p2421_p5 = scmp.lt.s32.totalorder %s2415_s24, %s2415_s24 }
   0xd   :  { %p2422_p6 = por %p2421_p5, %p2420_p4 }
   0xf   :  { %p2423_p7 = pnand %p2422_p6, %p2416_p3 }
  0x11   :  { %2426 = shalt.err (!%p2423_p7)
}
  0x12   :  { %s2502_s25 = smov 64   ;;  %s2503_s26 = smov 4  }
  0x13   :  { %25 = dma.hbm_to_vmem [thread:$0]  %s2769_s0, 4096, %s20_s16, [#allocation4], %s2502_s25, %s2502_s25, %s2503_s26  }
  0x14   :  { %s2504_s29 = smov [#allocation6]   ;;  %s2427_s7 = scalar_lea.hbm %s2770_s1, 2048 }
  0x15   :  { %s31_s30 = sshll.u32 %s2504_s29, 4  ;;  %p2428_p8 = scmp.ne.s32.totalorder %s2770_s1, %s2427_s7  ;;  %s32_s30 = int_to_ptr.vmem [resolvable:$true] %s31_s30 }
  0x16   :  { %p2431_p9 = scmp.lt.u32.totalorder %s2427_s7, %s2770_s1 }
  0x18   :  { %p2433_p10 = pnand %p2431_p9, %p2428_p8 }
  0x1a   :  { %2436 = shalt.err (!%p2433_p10)
}
  0x1b   :  { %s2437_s12 = scalar_lea.vmem %s32_s30, 2048  ;;  %p2442_p12 = scmp.lt.s32.totalorder %s32_s30, %s32_s30 }
  0x1c   :  { %p2438_p11 = scmp.ne.s32.totalorder %s32_s30, %s2437_s12  ;;  %p2443_p13 = scmp.lt.s32.totalorder %s2437_s12, %s2437_s12 }
  0x1e   :  { %p2444_p0 = por %p2443_p13, %p2442_p12 }
  0x20   :  { %p2445_p1 = pnand %p2444_p0, %p2438_p11 }
  0x22   :  { %2448 = shalt.err (!%p2445_p1)
}
  0x23   :  { %s2505_s0 = smov 128   ;;  %s2506_s13 = smov 8  }
  0x24   :  { %37 = dma.hbm_to_vmem [thread:$0]  %s2770_s1, 2048, %s32_s30, [#allocation7], %s2505_s0, %s2505_s0, %s2506_s13  }
  0x25   :  { %2493 = dma.done.wait [#allocation4], 4096  }
  0x26   :  { %2494 = vsyncadd [#allocation4], 4294963200 }
  0x27   :  { %2495 = dma.done.wait [#allocation7], 2048  }
  0x28   :  { %2496 = vsyncadd [#allocation7], 4294965248  ;;  %v2507_v0 = vmov 0   ;;  %v2349_v1 = vld [vmem:[#allocation6 + $0x4] ss:$8 sps:$4 sm:$0xff]   ;;  %v2377_v21 = vld [vmem:[#allocation3 + $0x10] sm:$0xff]   ;;  %v1401_v49 = vlaneseq }
  0x29   :  { %691 = vmatprep.mubr.bf16.mxu0 %v2507_v0  ;;  %851 = vmatprep.mubr.bf16.mxu1 %v2507_v0  ;;  %v2351_v2 = vld [vmem:[#allocation6] ss:$8 sps:$4 sm:$0xff]   ;;  %v2352_v3 = vld [vmem:[#allocation6 + $0x14] ss:$8 sps:$4 sm:$0xff]   ;;  %v2354_v4 = vld [vmem:[#allocation6 + $0x10] ss:$8 sps:$4 sm:$0xff]  }
  0x2a   :  { %659 = vmatprep.subr.bf16.mxu0 %v2349_v1  ;;  %2324 = vmatprep.subr.bf16.mxu1 %v2349_v1  ;;  %v2355_v5 = vld [vmem:[#allocation6 + $0x24] ss:$8 sps:$4 sm:$0xff]   ;;  %v2357_v6 = vld [vmem:[#allocation6 + $0x20] ss:$8 sps:$4 sm:$0xff]   ;;  %v2358_v7 = vld [vmem:[#allocation6 + $0x34] ss:$8 sps:$4 sm:$0xff]  }
  0x2b   :  { %660 = vmatpush1.bf16.msra.mxu0 %v2351_v2  ;;  %2332 = vmatpush1.bf16.msra.mxu1 %v2351_v2  ;;  %v2360_v8 = vld [vmem:[#allocation6 + $0x30] ss:$8 sps:$4 sm:$0xff]   ;;  %v2361_v9 = vld [vmem:[#allocation6 + $0x44] ss:$8 sps:$4 sm:$0xff]   ;;  %v2363_v10 = vld [vmem:[#allocation6 + $0x40] ss:$8 sps:$4 sm:$0xff]  }
  0x2c   :  { %661 = vmatprep.subr.bf16.mxu0 %v2352_v3  ;;  %2325 = vmatprep.subr.bf16.mxu1 %v2352_v3  ;;  %v2364_v11 = vld [vmem:[#allocation6 + $0x54] ss:$8 sps:$4 sm:$0xff]   ;;  %v2366_v12 = vld [vmem:[#allocation6 + $0x50] ss:$8 sps:$4 sm:$0xff]   ;;  %v2367_v13 = vld [vmem:[#allocation6 + $0x64] ss:$8 sps:$4 sm:$0xff]  }
  0x2d   :  { %v2369_v14 = vld [vmem:[#allocation6 + $0x60] ss:$8 sps:$4 sm:$0xff]   ;;  %v2370_v15 = vld [vmem:[#allocation6 + $0x74] ss:$8 sps:$4 sm:$0xff]   ;;  %v2372_v16 = vld [vmem:[#allocation6 + $0x70] ss:$8 sps:$4 sm:$0xff]  }
  0x2e   :  { %v2373_v17 = vld [vmem:[#allocation3] sm:$0xff]   ;;  %v2375_v19 = vld [vmem:[#allocation3 + $0x8] sm:$0xff]   ;;  %v2378_v22 = vld [vmem:[#allocation3 + $0x90] sm:$0xff]   ;;  %v1402_v50 = vshrl.u32 %v1401_v49, 7  ;;  %s2509_s18 = smov [#allocation8]  }
  0x2f   :  { %662 = vmatpush1.bf16.msra.mxu0 %v2354_v4  ;;  %2333 = vmatpush1.bf16.msra.mxu1 %v2354_v4  ;;  %v2374_v18 = vld [vmem:[#allocation3 + $0x80] sm:$0xff]   ;;  %v2376_v20 = vld [vmem:[#allocation3 + $0x88] sm:$0xff]   ;;  %v2379_v23 = vld [vmem:[#allocation3 + $0x18] sm:$0xff]   ;;  %s1928_s19 = sshll.u32 %s2509_s18, 4  ;;  %s2732_s19 = int_to_ptr.vmem [resolvable:$true] %s1928_s19 }
  0x30   :  { %663 = vmatprep.subr.bf16.mxu0 %v2355_v5  ;;  %2326 = vmatprep.subr.bf16.mxu1 %v2355_v5  ;;  %v2380_v24 = vld [vmem:[#allocation3 + $0x98] sm:$0xff]   ;;  %v2381_v25 = vld [vmem:[#allocation3 + $0x20] sm:$0xff]   ;;  %v2383_v27 = vld [vmem:[#allocation3 + $0x28] sm:$0xff]   ;;  %v1407_v51 = vsub.s32 1, %v1402_v50  ;;  %v1403_v53 = vsub.s32 0, %v1402_v50 }
  0x31   :  { %v2382_v26 = vld [vmem:[#allocation3 + $0xa0] sm:$0xff]   ;;  %v2384_v28 = vld [vmem:[#allocation3 + $0xa8] sm:$0xff]   ;;  %v2385_v29 = vld [vmem:[#allocation3 + $0x30] sm:$0xff]  }
  0x32   :  { %v2386_v30 = vld [vmem:[#allocation3 + $0xb0] sm:$0xff]   ;;  %v2387_v31 = vld [vmem:[#allocation3 + $0x38] sm:$0xff]   ;;  %v2389_v33 = vld [vmem:[#allocation3 + $0x40] sm:$0xff]  }
  0x33   :  { %664 = vmatpush1.bf16.msra.mxu0 %v2357_v6  ;;  %2334 = vmatpush1.bf16.msra.mxu1 %v2357_v6  ;;  %v2388_v32 = vld [vmem:[#allocation3 + $0xb8] sm:$0xff]   ;;  %v2390_v34 = vld [vmem:[#allocation3 + $0xc0] sm:$0xff]   ;;  %v2391_v35 = vld [vmem:[#allocation3 + $0x48] sm:$0xff]  }
  0x34   :  { %665 = vmatprep.subr.bf16.mxu0 %v2358_v7  ;;  %2327 = vmatprep.subr.bf16.mxu1 %v2358_v7  ;;  %v2392_v36 = vld [vmem:[#allocation3 + $0xc8] sm:$0xff]   ;;  %v2393_v37 = vld [vmem:[#allocation3 + $0x50] sm:$0xff]   ;;  %v2395_v39 = vld [vmem:[#allocation3 + $0x58] sm:$0xff]  }
  0x35   :  { %v2394_v38 = vld [vmem:[#allocation3 + $0xd0] sm:$0xff]   ;;  %v2396_v40 = vld [vmem:[#allocation3 + $0xd8] sm:$0xff]   ;;  %v2397_v41 = vld [vmem:[#allocation3 + $0x60] sm:$0xff]  }
  0x36   :  { %v2398_v42 = vld [vmem:[#allocation3 + $0xe0] sm:$0xff]   ;;  %v2399_v43 = vld [vmem:[#allocation3 + $0x68] sm:$0xff]   ;;  %v2401_v45 = vld [vmem:[#allocation3 + $0x70] sm:$0xff]  }
  0x37   :  { %666 = vmatpush1.bf16.msra.mxu0 %v2360_v8  ;;  %2335 = vmatpush1.bf16.msra.mxu1 %v2360_v8  ;;  %v2400_v44 = vld [vmem:[#allocation3 + $0xe8] sm:$0xff]   ;;  %v2402_v46 = vld [vmem:[#allocation3 + $0xf0] sm:$0xff]   ;;  %v2403_v47 = vld [vmem:[#allocation3 + $0x78] sm:$0xff]  }
  0x38   :  { %667 = vmatprep.subr.bf16.mxu0 %v2361_v9  ;;  %2328 = vmatprep.subr.bf16.mxu1 %v2361_v9  ;;  %v2404_v48 = vld [vmem:[#allocation3 + $0xf8] sm:$0xff]   ;;  %v1399_v52 = vld [vmem:[%s2771_s2] sm:$0x3]  ;;  %s2508_s2 = smov [#allocation9]  }
  0x39   :  { %v2600_v54 = vrot.slane %v1399_v52, %v1407_v51  ;;  %v2602_v55 = vrot.slane %v1399_v52, %v1403_v53  ;;  %s1940_s17 = sshll.u32 %s2508_s2, 4  ;;  %s1941_s17 = int_to_ptr.vmem [resolvable:$true] %s1940_s17 }
  0x3a   :  { %s2449_s20 = scalar_lea.vmem %s1941_s17, 8192  ;;  %p2454_p3 = scmp.lt.s32.totalorder %s1941_s17, %s1941_s17 }
  0x3b   :  { %668 = vmatpush1.bf16.msra.mxu0 %v2363_v10  ;;  %2336 = vmatpush1.bf16.msra.mxu1 %v2363_v10  ;;  %p2450_p2 = scmp.ne.s32.totalorder %s1941_s17, %s2449_s20  ;;  %p2455_p4 = scmp.lt.s32.totalorder %s2449_s20, %s2449_s20 }
  0x3c   :  { %669 = vmatprep.subr.bf16.mxu0 %v2364_v11  ;;  %2329 = vmatprep.subr.bf16.mxu1 %v2364_v11 }
  0x3d   :  { %p2456_p5 = por %p2455_p4, %p2454_p3 }
  0x3f   :  { %670 = vmatpush1.bf16.msra.mxu0 %v2366_v12  ;;  %2337 = vmatpush1.bf16.msra.mxu1 %v2366_v12  ;;  %p2457_p6 = pnand %p2456_p5, %p2450_p2 }
  0x40   :  { %671 = vmatprep.subr.bf16.mxu0 %v2367_v13  ;;  %2330 = vmatprep.subr.bf16.mxu1 %v2367_v13 }
  0x43   :  { %672 = vmatpush1.bf16.msra.mxu0 %v2369_v14  ;;  %2338 = vmatpush1.bf16.msra.mxu1 %v2369_v14 }
  0x44   :  { %673 = vmatprep.subr.bf16.mxu0 %v2370_v15  ;;  %2331 = vmatprep.subr.bf16.mxu1 %v2370_v15 }
  0x47   :  { %674 = vmatpush1.bf16.msra.mxu0 %v2372_v16  ;;  %2339 = vmatpush1.bf16.msra.mxu1 %v2372_v16 }
  0x4a   :  { %692 = vmatmul.mubr.bf16.vlgmr.msra.gmra.mrb[0].mxu0 %v2373_v17  ;;  %852 = vmatmul.mubr.bf16.vlgmr.msra.gmra.mrb[0].mxu1 %v2374_v18 }
  0x4b   :  { %701 = vmatprep.mubr.bf16.mxu0 %v2507_v0  ;;  %861 = vmatprep.mubr.bf16.mxu1 %v2507_v0 }
  0x52   :  { %702 = vmatmul.mubr.bf16.gmra.mrb[4].mxu0 %v2375_v19  ;;  %862 = vmatmul.mubr.bf16.gmra.mrb[4].mxu1 %v2376_v20 }
  0x53   :  { %711 = vmatprep.mubr.bf16.mxu0 %v2507_v0  ;;  %871 = vmatprep.mubr.bf16.mxu1 %v2507_v0 }
  0x5a   :  { %712 = vmatmul.mubr.bf16.gmra.mrb[8].mxu0 %v2377_v21  ;;  %872 = vmatmul.mubr.bf16.gmra.mrb[8].mxu1 %v2378_v22 }
  0x5b   :  { %721 = vmatprep.mubr.bf16.mxu0 %v2507_v0  ;;  %881 = vmatprep.mubr.bf16.mxu1 %v2507_v0 }
  0x62   :  { %722 = vmatmul.mubr.bf16.gmra.mrb[12].mxu0 %v2379_v23  ;;  %882 = vmatmul.mubr.bf16.gmra.mrb[12].mxu1 %v2380_v24 }
  0x63   :  { %731 = vmatprep.mubr.bf16.mxu0 %v2507_v0  ;;  %891 = vmatprep.mubr.bf16.mxu1 %v2507_v0 }
  0x6a   :  { %732 = vmatmul.mubr.bf16.gmra.mrb[16].mxu0 %v2381_v25  ;;  %892 = vmatmul.mubr.bf16.gmra.mrb[16].mxu1 %v2382_v26 }
  0x6b   :  { %741 = vmatprep.mubr.bf16.mxu0 %v2507_v0  ;;  %901 = vmatprep.mubr.bf16.mxu1 %v2507_v0 }
  0x72   :  { %742 = vmatmul.mubr.bf16.gmra.mrb[20].mxu0 %v2383_v27  ;;  %902 = vmatmul.mubr.bf16.gmra.mrb[20].mxu1 %v2384_v28 }
  0x73   :  { %751 = vmatprep.mubr.bf16.mxu0 %v2507_v0  ;;  %911 = vmatprep.mubr.bf16.mxu1 %v2507_v0 }
  0x7a   :  { %752 = vmatmul.mubr.bf16.gmra.mrb[24].mxu0 %v2385_v29  ;;  %912 = vmatmul.mubr.bf16.gmra.mrb[24].mxu1 %v2386_v30 }
  0x7b   :  { %761 = vmatprep.mubr.bf16.mxu0 %v2507_v0  ;;  %921 = vmatprep.mubr.bf16.mxu1 %v2507_v0 }
  0x82   :  { %762 = vmatmul.mubr.bf16.gmra.mrb[28].mxu0 %v2387_v31  ;;  %922 = vmatmul.mubr.bf16.gmra.mrb[28].mxu1 %v2388_v32 }
  0x83   :  { %771 = vmatprep.mubr.bf16.mxu0 %v2507_v0  ;;  %931 = vmatprep.mubr.bf16.mxu1 %v2507_v0 }
  0x8a   :  { %772 = vmatmul.mubr.bf16.gmra.mrb[32].mxu0 %v2389_v33  ;;  %932 = vmatmul.mubr.bf16.gmra.mrb[32].mxu1 %v2390_v34 }
  0x8b   :  { %781 = vmatprep.mubr.bf16.mxu0 %v2507_v0  ;;  %941 = vmatprep.mubr.bf16.mxu1 %v2507_v0 }
  0x92   :  { %782 = vmatmul.mubr.bf16.gmra.mrb[36].mxu0 %v2391_v35  ;;  %942 = vmatmul.mubr.bf16.gmra.mrb[36].mxu1 %v2392_v36 }
  0x93   :  { %791 = vmatprep.mubr.bf16.mxu0 %v2507_v0  ;;  %951 = vmatprep.mubr.bf16.mxu1 %v2507_v0 }
  0x9a   :  { %792 = vmatmul.mubr.bf16.gmra.mrb[40].mxu0 %v2393_v37  ;;  %952 = vmatmul.mubr.bf16.gmra.mrb[40].mxu1 %v2394_v38 }
  0x9b   :  { %801 = vmatprep.mubr.bf16.mxu0 %v2507_v0  ;;  %961 = vmatprep.mubr.bf16.mxu1 %v2507_v0 }
  0xa2   :  { %802 = vmatmul.mubr.bf16.gmra.mrb[44].mxu0 %v2395_v39  ;;  %962 = vmatmul.mubr.bf16.gmra.mrb[44].mxu1 %v2396_v40 }
  0xa3   :  { %811 = vmatprep.mubr.bf16.mxu0 %v2507_v0  ;;  %971 = vmatprep.mubr.bf16.mxu1 %v2507_v0 }
  0xaa   :  { %812 = vmatmul.mubr.bf16.gmra.mrb[48].mxu0 %v2397_v41  ;;  %972 = vmatmul.mubr.bf16.gmra.mrb[48].mxu1 %v2398_v42 }
  0xab   :  { %821 = vmatprep.mubr.bf16.mxu0 %v2507_v0  ;;  %981 = vmatprep.mubr.bf16.mxu1 %v2507_v0 }
  0xb2   :  { %822 = vmatmul.mubr.bf16.gmra.mrb[52].mxu0 %v2399_v43  ;;  %982 = vmatmul.mubr.bf16.gmra.mrb[52].mxu1 %v2400_v44 }
  0xb3   :  { %831 = vmatprep.mubr.bf16.mxu0 %v2507_v0  ;;  %991 = vmatprep.mubr.bf16.mxu1 %v2507_v0 }
  0xba   :  { %832 = vmatmul.mubr.bf16.gmra.mrb[56].mxu0 %v2401_v45  ;;  %992 = vmatmul.mubr.bf16.gmra.mrb[56].mxu1 %v2402_v46 }
  0xbb   :  { %841 = vmatprep.mubr.bf16.mxu0 %v2507_v0  ;;  %1001 = vmatprep.mubr.bf16.mxu1 %v2507_v0 }
  0xc2   :  { %842 = vmatmul.mubr.bf16.gmra.mrb[60].mxu0 %v2403_v47  ;;  %1002 = vmatmul.mubr.bf16.gmra.mrb[60].mxu1 %v2404_v48 }
 0x11d   :  { %v693_v56 = vpop.f32.mrb[0].mxu0  ;;  %v853_v57 = vpop.f32.mrb[0].mxu1 }
 0x11e   :  { %v695_v58 = vpop.f32.mrb[1].mxu0  ;;  %v855_v59 = vpop.f32.mrb[1].mxu1  ;;  %v1411_v0 = vadd.f32 %v2602_v55, %v693_v56  ;;  %v1475_v1 = vadd.f32 %v2602_v55, %v853_v57 }
 0x11f   :  { %v1412_v60 = vadd.f32 %v2600_v54, %v695_v58  ;;  %v1476_v61 = vadd.f32 %v2600_v54, %v855_v59  ;;  %v697_v62 = vpop.f32.mrb[2].mxu0  ;;  %v857_v63 = vpop.f32.mrb[2].mxu1 }
 0x120   :  { %v1413_v2 = vadd.f32 %v2602_v55, %v697_v62  ;;  %v1477_v3 = vadd.f32 %v2602_v55, %v857_v63  ;;  %v699_v4 = vpop.f32.mrb[3].mxu0  ;;  %v859_v5 = vpop.f32.mrb[3].mxu1 }
 0x121   :  { %1859 = vst [vmem:[#allocation9] sm:$0xff] %v1412_v60  ;;  %1891 = vst [vmem:[#allocation9 + $0x100] sm:$0xff] %v1476_v61  ;;  %v1414_v6 = vadd.f32 %v2600_v54, %v699_v4  ;;  %v1478_v7 = vadd.f32 %v2600_v54, %v859_v5 }
 0x122   :  { %v2136_v8 = vpack.c.bf16 %v1413_v2, %v1411_v0  ;;  %v2216_v9 = vpack.c.bf16 %v1477_v3, %v1475_v1 }
 0x123   :  { %1860 = vst [vmem:[#allocation9 + $0x8] sm:$0xff] %v1414_v6  ;;  %1892 = vst [vmem:[#allocation9 + $0x108] sm:$0xff] %v1478_v7 }
 0x124   :  { %2137 = vst [vmem:[#allocation8] sm:$0xff] %v2136_v8   ;;  %2308 = vst [vmem:[#allocation8 + $0x80] sm:$0xff] %v2216_v9  }
 0x125   :  { %v703_v10 = vpop.f32.mrb[4].mxu0  ;;  %v863_v11 = vpop.f32.mrb[4].mxu1 }
 0x126   :  { %v705_v12 = vpop.f32.mrb[5].mxu0  ;;  %v865_v13 = vpop.f32.mrb[5].mxu1  ;;  %v1415_v18 = vadd.f32 %v2602_v55, %v703_v10  ;;  %v1479_v19 = vadd.f32 %v2602_v55, %v863_v11 }
 0x127   :  { %v1416_v14 = vadd.f32 %v2600_v54, %v705_v12  ;;  %v1480_v15 = vadd.f32 %v2600_v54, %v865_v13  ;;  %v707_v16 = vpop.f32.mrb[6].mxu0  ;;  %v867_v17 = vpop.f32.mrb[6].mxu1 }
 0x128   :  { %v1417_v20 = vadd.f32 %v2602_v55, %v707_v16  ;;  %v1481_v21 = vadd.f32 %v2602_v55, %v867_v17  ;;  %v709_v22 = vpop.f32.mrb[7].mxu0  ;;  %v869_v23 = vpop.f32.mrb[7].mxu1 }
 0x129   :  { %1861 = vst [vmem:[#allocation9 + $0x10] sm:$0xff] %v1416_v14  ;;  %1893 = vst [vmem:[#allocation9 + $0x110] sm:$0xff] %v1480_v15  ;;  %v1418_v24 = vadd.f32 %v2600_v54, %v709_v22  ;;  %v1482_v25 = vadd.f32 %v2600_v54, %v869_v23 }
 0x12a   :  { %v2141_v26 = vpack.c.bf16 %v1417_v20, %v1415_v18  ;;  %v2221_v27 = vpack.c.bf16 %v1481_v21, %v1479_v19 }
 0x12b   :  { %1862 = vst [vmem:[#allocation9 + $0x18] sm:$0xff] %v1418_v24  ;;  %1894 = vst [vmem:[#allocation9 + $0x118] sm:$0xff] %v1482_v25 }
 0x12c   :  { %2293 = vst [vmem:[#allocation8 + $0x8] sm:$0xff] %v2141_v26   ;;  %2309 = vst [vmem:[#allocation8 + $0x88] sm:$0xff] %v2221_v27  }
 0x12d   :  { %v713_v28 = vpop.f32.mrb[8].mxu0  ;;  %v873_v29 = vpop.f32.mrb[8].mxu1 }
 0x12e   :  { %v715_v30 = vpop.f32.mrb[9].mxu0  ;;  %v875_v31 = vpop.f32.mrb[9].mxu1  ;;  %v1419_v36 = vadd.f32 %v2602_v55, %v713_v28  ;;  %v1483_v37 = vadd.f32 %v2602_v55, %v873_v29 }
 0x12f   :  { %v1420_v32 = vadd.f32 %v2600_v54, %v715_v30  ;;  %v1484_v33 = vadd.f32 %v2600_v54, %v875_v31  ;;  %v717_v34 = vpop.f32.mrb[10].mxu0  ;;  %v877_v35 = vpop.f32.mrb[10].mxu1 }
 0x130   :  { %v1421_v38 = vadd.f32 %v2602_v55, %v717_v34  ;;  %v1485_v39 = vadd.f32 %v2602_v55, %v877_v35  ;;  %v719_v40 = vpop.f32.mrb[11].mxu0  ;;  %v879_v41 = vpop.f32.mrb[11].mxu1 }
 0x131   :  { %1863 = vst [vmem:[#allocation9 + $0x20] sm:$0xff] %v1420_v32  ;;  %1895 = vst [vmem:[#allocation9 + $0x120] sm:$0xff] %v1484_v33  ;;  %v1422_v42 = vadd.f32 %v2600_v54, %v719_v40  ;;  %v1486_v43 = vadd.f32 %v2600_v54, %v879_v41 }
 0x132   :  { %v2146_v44 = vpack.c.bf16 %v1421_v38, %v1419_v36  ;;  %v2226_v45 = vpack.c.bf16 %v1485_v39, %v1483_v37 }
 0x133   :  { %1864 = vst [vmem:[#allocation9 + $0x28] sm:$0xff] %v1422_v42  ;;  %1896 = vst [vmem:[#allocation9 + $0x128] sm:$0xff] %v1486_v43 }
 0x134   :  { %2294 = vst [vmem:[#allocation8 + $0x10] sm:$0xff] %v2146_v44   ;;  %2310 = vst [vmem:[#allocation8 + $0x90] sm:$0xff] %v2226_v45  }
 0x135   :  { %v723_v46 = vpop.f32.mrb[12].mxu0  ;;  %v883_v47 = vpop.f32.mrb[12].mxu1 }
 0x136   :  { %v725_v48 = vpop.f32.mrb[13].mxu0  ;;  %v885_v49 = vpop.f32.mrb[13].mxu1  ;;  %v1423_v56 = vadd.f32 %v2602_v55, %v723_v46  ;;  %v1487_v57 = vadd.f32 %v2602_v55, %v883_v47 }
 0x137   :  { %v1424_v50 = vadd.f32 %v2600_v54, %v725_v48  ;;  %v1488_v51 = vadd.f32 %v2600_v54, %v885_v49  ;;  %v727_v52 = vpop.f32.mrb[14].mxu0  ;;  %v887_v53 = vpop.f32.mrb[14].mxu1 }
 0x138   :  { %v1425_v58 = vadd.f32 %v2602_v55, %v727_v52  ;;  %v1489_v59 = vadd.f32 %v2602_v55, %v887_v53  ;;  %v729_v60 = vpop.f32.mrb[15].mxu0  ;;  %v889_v61 = vpop.f32.mrb[15].mxu1 }
 0x139   :  { %1865 = vst [vmem:[#allocation9 + $0x30] sm:$0xff] %v1424_v50  ;;  %1897 = vst [vmem:[#allocation9 + $0x130] sm:$0xff] %v1488_v51  ;;  %v1426_v62 = vadd.f32 %v2600_v54, %v729_v60  ;;  %v1490_v63 = vadd.f32 %v2600_v54, %v889_v61 }
 0x13a   :  { %v2151_v0 = vpack.c.bf16 %v1425_v58, %v1423_v56  ;;  %v2231_v1 = vpack.c.bf16 %v1489_v59, %v1487_v57 }
 0x13b   :  { %1866 = vst [vmem:[#allocation9 + $0x38] sm:$0xff] %v1426_v62  ;;  %1898 = vst [vmem:[#allocation9 + $0x138] sm:$0xff] %v1490_v63 }
 0x13c   :  { %2295 = vst [vmem:[#allocation8 + $0x18] sm:$0xff] %v2151_v0   ;;  %2311 = vst [vmem:[#allocation8 + $0x98] sm:$0xff] %v2231_v1  }
 0x13d   :  { %v733_v2 = vpop.f32.mrb[16].mxu0  ;;  %v893_v3 = vpop.f32.mrb[16].mxu1 }
 0x13e   :  { %v735_v4 = vpop.f32.mrb[17].mxu0  ;;  %v895_v5 = vpop.f32.mrb[17].mxu1  ;;  %v1427_v10 = vadd.f32 %v2602_v55, %v733_v2  ;;  %v1491_v11 = vadd.f32 %v2602_v55, %v893_v3 }
 0x13f   :  { %v1428_v6 = vadd.f32 %v2600_v54, %v735_v4  ;;  %v1492_v7 = vadd.f32 %v2600_v54, %v895_v5  ;;  %v737_v8 = vpop.f32.mrb[18].mxu0  ;;  %v897_v9 = vpop.f32.mrb[18].mxu1 }
 0x140   :  { %v1429_v12 = vadd.f32 %v2602_v55, %v737_v8  ;;  %v1493_v13 = vadd.f32 %v2602_v55, %v897_v9  ;;  %v739_v14 = vpop.f32.mrb[19].mxu0  ;;  %v899_v15 = vpop.f32.mrb[19].mxu1 }
 0x141   :  { %1867 = vst [vmem:[#allocation9 + $0x40] sm:$0xff] %v1428_v6  ;;  %1899 = vst [vmem:[#allocation9 + $0x140] sm:$0xff] %v1492_v7  ;;  %v1430_v16 = vadd.f32 %v2600_v54, %v739_v14  ;;  %v1494_v17 = vadd.f32 %v2600_v54, %v899_v15 }
 0x142   :  { %v2156_v18 = vpack.c.bf16 %v1429_v12, %v1427_v10  ;;  %v2236_v19 = vpack.c.bf16 %v1493_v13, %v1491_v11 }
 0x143   :  { %1868 = vst [vmem:[#allocation9 + $0x48] sm:$0xff] %v1430_v16  ;;  %1900 = vst [vmem:[#allocation9 + $0x148] sm:$0xff] %v1494_v17 }
 0x144   :  { %2296 = vst [vmem:[#allocation8 + $0x20] sm:$0xff] %v2156_v18   ;;  %2312 = vst [vmem:[#allocation8 + $0xa0] sm:$0xff] %v2236_v19  }
 0x145   :  { %v743_v20 = vpop.f32.mrb[20].mxu0  ;;  %v903_v21 = vpop.f32.mrb[20].mxu1 }
 0x146   :  { %v745_v22 = vpop.f32.mrb[21].mxu0  ;;  %v905_v23 = vpop.f32.mrb[21].mxu1  ;;  %v1431_v28 = vadd.f32 %v2602_v55, %v743_v20  ;;  %v1495_v29 = vadd.f32 %v2602_v55, %v903_v21 }
 0x147   :  { %v1432_v24 = vadd.f32 %v2600_v54, %v745_v22  ;;  %v1496_v25 = vadd.f32 %v2600_v54, %v905_v23  ;;  %v747_v26 = vpop.f32.mrb[22].mxu0  ;;  %v907_v27 = vpop.f32.mrb[22].mxu1 }
 0x148   :  { %v1433_v30 = vadd.f32 %v2602_v55, %v747_v26  ;;  %v1497_v31 = vadd.f32 %v2602_v55, %v907_v27  ;;  %v749_v32 = vpop.f32.mrb[23].mxu0  ;;  %v909_v33 = vpop.f32.mrb[23].mxu1 }
 0x149   :  { %1869 = vst [vmem:[#allocation9 + $0x50] sm:$0xff] %v1432_v24  ;;  %1901 = vst [vmem:[#allocation9 + $0x150] sm:$0xff] %v1496_v25  ;;  %v1434_v34 = vadd.f32 %v2600_v54, %v749_v32  ;;  %v1498_v35 = vadd.f32 %v2600_v54, %v909_v33 }
 0x14a   :  { %v2161_v36 = vpack.c.bf16 %v1433_v30, %v1431_v28  ;;  %v2241_v37 = vpack.c.bf16 %v1497_v31, %v1495_v29 }
 0x14b   :  { %1870 = vst [vmem:[#allocation9 + $0x58] sm:$0xff] %v1434_v34  ;;  %1902 = vst [vmem:[#allocation9 + $0x158] sm:$0xff] %v1498_v35 }
 0x14c   :  { %2297 = vst [vmem:[#allocation8 + $0x28] sm:$0xff] %v2161_v36   ;;  %2313 = vst [vmem:[#allocation8 + $0xa8] sm:$0xff] %v2241_v37  }
 0x14d   :  { %v753_v38 = vpop.f32.mrb[24].mxu0  ;;  %v913_v39 = vpop.f32.mrb[24].mxu1 }
 0x14e   :  { %v755_v40 = vpop.f32.mrb[25].mxu0  ;;  %v915_v41 = vpop.f32.mrb[25].mxu1  ;;  %v1435_v46 = vadd.f32 %v2602_v55, %v753_v38  ;;  %v1499_v47 = vadd.f32 %v2602_v55, %v913_v39 }
 0x14f   :  { %v1436_v42 = vadd.f32 %v2600_v54, %v755_v40  ;;  %v1500_v43 = vadd.f32 %v2600_v54, %v915_v41  ;;  %v757_v44 = vpop.f32.mrb[26].mxu0  ;;  %v917_v45 = vpop.f32.mrb[26].mxu1 }
 0x150   :  { %v1437_v48 = vadd.f32 %v2602_v55, %v757_v44  ;;  %v1501_v49 = vadd.f32 %v2602_v55, %v917_v45  ;;  %v759_v50 = vpop.f32.mrb[27].mxu0  ;;  %v919_v51 = vpop.f32.mrb[27].mxu1 }
 0x151   :  { %1871 = vst [vmem:[#allocation9 + $0x60] sm:$0xff] %v1436_v42  ;;  %1903 = vst [vmem:[#allocation9 + $0x160] sm:$0xff] %v1500_v43  ;;  %v1438_v52 = vadd.f32 %v2600_v54, %v759_v50  ;;  %v1502_v53 = vadd.f32 %v2600_v54, %v919_v51 }
 0x152   :  { %v2166_v56 = vpack.c.bf16 %v1437_v48, %v1435_v46  ;;  %v2246_v57 = vpack.c.bf16 %v1501_v49, %v1499_v47 }
 0x153   :  { %1872 = vst [vmem:[#allocation9 + $0x68] sm:$0xff] %v1438_v52  ;;  %1904 = vst [vmem:[#allocation9 + $0x168] sm:$0xff] %v1502_v53 }
 0x154   :  { %2298 = vst [vmem:[#allocation8 + $0x30] sm:$0xff] %v2166_v56   ;;  %2314 = vst [vmem:[#allocation8 + $0xb0] sm:$0xff] %v2246_v57  }
 0x155   :  { %v763_v58 = vpop.f32.mrb[28].mxu0  ;;  %v923_v59 = vpop.f32.mrb[28].mxu1 }
 0x156   :  { %v765_v60 = vpop.f32.mrb[29].mxu0  ;;  %v925_v61 = vpop.f32.mrb[29].mxu1  ;;  %v1439_v2 = vadd.f32 %v2602_v55, %v763_v58  ;;  %v1503_v3 = vadd.f32 %v2602_v55, %v923_v59 }
 0x157   :  { %v1440_v62 = vadd.f32 %v2600_v54, %v765_v60  ;;  %v1504_v63 = vadd.f32 %v2600_v54, %v925_v61  ;;  %v767_v0 = vpop.f32.mrb[30].mxu0  ;;  %v927_v1 = vpop.f32.mrb[30].mxu1 }
 0x158   :  { %v1441_v4 = vadd.f32 %v2602_v55, %v767_v0  ;;  %v1505_v5 = vadd.f32 %v2602_v55, %v927_v1  ;;  %v769_v6 = vpop.f32.mrb[31].mxu0  ;;  %v929_v7 = vpop.f32.mrb[31].mxu1 }
 0x159   :  { %1873 = vst [vmem:[#allocation9 + $0x70] sm:$0xff] %v1440_v62  ;;  %1905 = vst [vmem:[#allocation9 + $0x170] sm:$0xff] %v1504_v63  ;;  %v1442_v8 = vadd.f32 %v2600_v54, %v769_v6  ;;  %v1506_v9 = vadd.f32 %v2600_v54, %v929_v7 }
 0x15a   :  { %v2171_v10 = vpack.c.bf16 %v1441_v4, %v1439_v2  ;;  %v2251_v11 = vpack.c.bf16 %v1505_v5, %v1503_v3 }
 0x15b   :  { %1874 = vst [vmem:[#allocation9 + $0x78] sm:$0xff] %v1442_v8  ;;  %1906 = vst [vmem:[#allocation9 + $0x178] sm:$0xff] %v1506_v9 }
 0x15c   :  { %2299 = vst [vmem:[#allocation8 + $0x38] sm:$0xff] %v2171_v10   ;;  %2315 = vst [vmem:[#allocation8 + $0xb8] sm:$0xff] %v2251_v11  }
 0x15d   :  { %v773_v12 = vpop.f32.mrb[32].mxu0  ;;  %v933_v13 = vpop.f32.mrb[32].mxu1 }
 0x15e   :  { %v775_v14 = vpop.f32.mrb[33].mxu0  ;;  %v935_v15 = vpop.f32.mrb[33].mxu1  ;;  %v1443_v20 = vadd.f32 %v2602_v55, %v773_v12  ;;  %v1507_v21 = vadd.f32 %v2602_v55, %v933_v13 }
 0x15f   :  { %v1444_v16 = vadd.f32 %v2600_v54, %v775_v14  ;;  %v1508_v17 = vadd.f32 %v2600_v54, %v935_v15  ;;  %v777_v18 = vpop.f32.mrb[34].mxu0  ;;  %v937_v19 = vpop.f32.mrb[34].mxu1 }
 0x160   :  { %v1445_v22 = vadd.f32 %v2602_v55, %v777_v18  ;;  %v1509_v23 = vadd.f32 %v2602_v55, %v937_v19  ;;  %v779_v24 = vpop.f32.mrb[35].mxu0  ;;  %v939_v25 = vpop.f32.mrb[35].mxu1 }
 0x161   :  { %1875 = vst [vmem:[#allocation9 + $0x80] sm:$0xff] %v1444_v16  ;;  %1907 = vst [vmem:[#allocation9 + $0x180] sm:$0xff] %v1508_v17  ;;  %v1446_v26 = vadd.f32 %v2600_v54, %v779_v24  ;;  %v1510_v27 = vadd.f32 %v2600_v54, %v939_v25 }
 0x162   :  { %v2176_v28 = vpack.c.bf16 %v1445_v22, %v1443_v20  ;;  %v2256_v29 = vpack.c.bf16 %v1509_v23, %v1507_v21 }
 0x163   :  { %1876 = vst [vmem:[#allocation9 + $0x88] sm:$0xff] %v1446_v26  ;;  %1908 = vst [vmem:[#allocation9 + $0x188] sm:$0xff] %v1510_v27 }
 0x164   :  { %2300 = vst [vmem:[#allocation8 + $0x40] sm:$0xff] %v2176_v28   ;;  %2316 = vst [vmem:[#allocation8 + $0xc0] sm:$0xff] %v2256_v29  }
 0x165   :  { %v783_v30 = vpop.f32.mrb[36].mxu0  ;;  %v943_v31 = vpop.f32.mrb[36].mxu1 }
 0x166   :  { %v785_v32 = vpop.f32.mrb[37].mxu0  ;;  %v945_v33 = vpop.f32.mrb[37].mxu1  ;;  %v1447_v38 = vadd.f32 %v2602_v55, %v783_v30  ;;  %v1511_v39 = vadd.f32 %v2602_v55, %v943_v31 }
 0x167   :  { %v1448_v34 = vadd.f32 %v2600_v54, %v785_v32  ;;  %v1512_v35 = vadd.f32 %v2600_v54, %v945_v33  ;;  %v787_v36 = vpop.f32.mrb[38].mxu0  ;;  %v947_v37 = vpop.f32.mrb[38].mxu1 }
 0x168   :  { %v1449_v40 = vadd.f32 %v2602_v55, %v787_v36  ;;  %v1513_v41 = vadd.f32 %v2602_v55, %v947_v37  ;;  %v789_v42 = vpop.f32.mrb[39].mxu0  ;;  %v949_v43 = vpop.f32.mrb[39].mxu1 }
 0x169   :  { %1877 = vst [vmem:[#allocation9 + $0x90] sm:$0xff] %v1448_v34  ;;  %1909 = vst [vmem:[#allocation9 + $0x190] sm:$0xff] %v1512_v35  ;;  %v1450_v44 = vadd.f32 %v2600_v54, %v789_v42  ;;  %v1514_v45 = vadd.f32 %v2600_v54, %v949_v43 }
 0x16a   :  { %v2181_v46 = vpack.c.bf16 %v1449_v40, %v1447_v38  ;;  %v2261_v47 = vpack.c.bf16 %v1513_v41, %v1511_v39 }
 0x16b   :  { %1878 = vst [vmem:[#allocation9 + $0x98] sm:$0xff] %v1450_v44  ;;  %1910 = vst [vmem:[#allocation9 + $0x198] sm:$0xff] %v1514_v45 }
 0x16c   :  { %2301 = vst [vmem:[#allocation8 + $0x48] sm:$0xff] %v2181_v46   ;;  %2317 = vst [vmem:[#allocation8 + $0xc8] sm:$0xff] %v2261_v47  }
 0x16d   :  { %v793_v48 = vpop.f32.mrb[40].mxu0  ;;  %v953_v49 = vpop.f32.mrb[40].mxu1 }
 0x16e   :  { %v795_v50 = vpop.f32.mrb[41].mxu0  ;;  %v955_v51 = vpop.f32.mrb[41].mxu1  ;;  %v1451_v58 = vadd.f32 %v2602_v55, %v793_v48  ;;  %v1515_v59 = vadd.f32 %v2602_v55, %v953_v49 }
 0x16f   :  { %v1452_v52 = vadd.f32 %v2600_v54, %v795_v50  ;;  %v1516_v53 = vadd.f32 %v2600_v54, %v955_v51  ;;  %v797_v56 = vpop.f32.mrb[42].mxu0  ;;  %v957_v57 = vpop.f32.mrb[42].mxu1 }
 0x170   :  { %v1453_v60 = vadd.f32 %v2602_v55, %v797_v56  ;;  %v1517_v61 = vadd.f32 %v2602_v55, %v957_v57  ;;  %v799_v62 = vpop.f32.mrb[43].mxu0  ;;  %v959_v63 = vpop.f32.mrb[43].mxu1 }
 0x171   :  { %1879 = vst [vmem:[#allocation9 + $0xa0] sm:$0xff] %v1452_v52  ;;  %1911 = vst [vmem:[#allocation9 + $0x1a0] sm:$0xff] %v1516_v53  ;;  %v1454_v0 = vadd.f32 %v2600_v54, %v799_v62  ;;  %v1518_v1 = vadd.f32 %v2600_v54, %v959_v63 }
 0x172   :  { %v2186_v2 = vpack.c.bf16 %v1453_v60, %v1451_v58  ;;  %v2266_v3 = vpack.c.bf16 %v1517_v61, %v1515_v59 }
 0x173   :  { %1880 = vst [vmem:[#allocation9 + $0xa8] sm:$0xff] %v1454_v0  ;;  %1912 = vst [vmem:[#allocation9 + $0x1a8] sm:$0xff] %v1518_v1 }
 0x174   :  { %2302 = vst [vmem:[#allocation8 + $0x50] sm:$0xff] %v2186_v2   ;;  %2318 = vst [vmem:[#allocation8 + $0xd0] sm:$0xff] %v2266_v3  }
 0x175   :  { %v803_v4 = vpop.f32.mrb[44].mxu0  ;;  %v963_v5 = vpop.f32.mrb[44].mxu1 }
 0x176   :  { %v805_v6 = vpop.f32.mrb[45].mxu0  ;;  %v965_v7 = vpop.f32.mrb[45].mxu1  ;;  %v1455_v12 = vadd.f32 %v2602_v55, %v803_v4  ;;  %v1519_v13 = vadd.f32 %v2602_v55, %v963_v5 }
 0x177   :  { %v1456_v8 = vadd.f32 %v2600_v54, %v805_v6  ;;  %v1520_v9 = vadd.f32 %v2600_v54, %v965_v7  ;;  %v807_v10 = vpop.f32.mrb[46].mxu0  ;;  %v967_v11 = vpop.f32.mrb[46].mxu1 }
 0x178   :  { %v1457_v14 = vadd.f32 %v2602_v55, %v807_v10  ;;  %v1521_v15 = vadd.f32 %v2602_v55, %v967_v11  ;;  %v809_v16 = vpop.f32.mrb[47].mxu0  ;;  %v969_v17 = vpop.f32.mrb[47].mxu1 }
 0x179   :  { %1881 = vst [vmem:[#allocation9 + $0xb0] sm:$0xff] %v1456_v8  ;;  %1913 = vst [vmem:[#allocation9 + $0x1b0] sm:$0xff] %v1520_v9  ;;  %v1458_v18 = vadd.f32 %v2600_v54, %v809_v16  ;;  %v1522_v19 = vadd.f32 %v2600_v54, %v969_v17 }
 0x17a   :  { %v2191_v20 = vpack.c.bf16 %v1457_v14, %v1455_v12  ;;  %v2271_v21 = vpack.c.bf16 %v1521_v15, %v1519_v13 }
 0x17b   :  { %1882 = vst [vmem:[#allocation9 + $0xb8] sm:$0xff] %v1458_v18  ;;  %1914 = vst [vmem:[#allocation9 + $0x1b8] sm:$0xff] %v1522_v19 }
 0x17c   :  { %2303 = vst [vmem:[#allocation8 + $0x58] sm:$0xff] %v2191_v20   ;;  %2319 = vst [vmem:[#allocation8 + $0xd8] sm:$0xff] %v2271_v21  }
 0x17d   :  { %v813_v22 = vpop.f32.mrb[48].mxu0  ;;  %v973_v23 = vpop.f32.mrb[48].mxu1 }
 0x17e   :  { %v815_v24 = vpop.f32.mrb[49].mxu0  ;;  %v975_v25 = vpop.f32.mrb[49].mxu1  ;;  %v1459_v30 = vadd.f32 %v2602_v55, %v813_v22  ;;  %v1523_v31 = vadd.f32 %v2602_v55, %v973_v23 }
 0x17f   :  { %v1460_v26 = vadd.f32 %v2600_v54, %v815_v24  ;;  %v1524_v27 = vadd.f32 %v2600_v54, %v975_v25  ;;  %v817_v28 = vpop.f32.mrb[50].mxu0  ;;  %v977_v29 = vpop.f32.mrb[50].mxu1 }
 0x180   :  { %v1461_v32 = vadd.f32 %v2602_v55, %v817_v28  ;;  %v1525_v33 = vadd.f32 %v2602_v55, %v977_v29  ;;  %v819_v34 = vpop.f32.mrb[51].mxu0  ;;  %v979_v35 = vpop.f32.mrb[51].mxu1 }
 0x181   :  { %1883 = vst [vmem:[#allocation9 + $0xc0] sm:$0xff] %v1460_v26  ;;  %1915 = vst [vmem:[#allocation9 + $0x1c0] sm:$0xff] %v1524_v27  ;;  %v1462_v36 = vadd.f32 %v2600_v54, %v819_v34  ;;  %v1526_v37 = vadd.f32 %v2600_v54, %v979_v35 }
 0x182   :  { %v2196_v38 = vpack.c.bf16 %v1461_v32, %v1459_v30  ;;  %v2276_v39 = vpack.c.bf16 %v1525_v33, %v1523_v31 }
 0x183   :  { %1884 = vst [vmem:[#allocation9 + $0xc8] sm:$0xff] %v1462_v36  ;;  %1916 = vst [vmem:[#allocation9 + $0x1c8] sm:$0xff] %v1526_v37 }
 0x184   :  { %2304 = vst [vmem:[#allocation8 + $0x60] sm:$0xff] %v2196_v38   ;;  %2320 = vst [vmem:[#allocation8 + $0xe0] sm:$0xff] %v2276_v39  }
 0x185   :  { %v823_v40 = vpop.f32.mrb[52].mxu0  ;;  %v983_v41 = vpop.f32.mrb[52].mxu1 }
 0x186   :  { %v825_v42 = vpop.f32.mrb[53].mxu0  ;;  %v985_v43 = vpop.f32.mrb[53].mxu1  ;;  %v1463_v48 = vadd.f32 %v2602_v55, %v823_v40  ;;  %v1527_v49 = vadd.f32 %v2602_v55, %v983_v41 }
 0x187   :  { %v1464_v44 = vadd.f32 %v2600_v54, %v825_v42  ;;  %v1528_v45 = vadd.f32 %v2600_v54, %v985_v43  ;;  %v827_v46 = vpop.f32.mrb[54].mxu0  ;;  %v987_v47 = vpop.f32.mrb[54].mxu1 }
 0x188   :  { %v1465_v50 = vadd.f32 %v2602_v55, %v827_v46  ;;  %v1529_v51 = vadd.f32 %v2602_v55, %v987_v47  ;;  %v829_v52 = vpop.f32.mrb[55].mxu0  ;;  %v989_v53 = vpop.f32.mrb[55].mxu1 }
 0x189   :  { %1885 = vst [vmem:[#allocation9 + $0xd0] sm:$0xff] %v1464_v44  ;;  %1917 = vst [vmem:[#allocation9 + $0x1d0] sm:$0xff] %v1528_v45  ;;  %v1466_v56 = vadd.f32 %v2600_v54, %v829_v52  ;;  %v1530_v57 = vadd.f32 %v2600_v54, %v989_v53 }
 0x18a   :  { %v2201_v58 = vpack.c.bf16 %v1465_v50, %v1463_v48  ;;  %v2281_v59 = vpack.c.bf16 %v1529_v51, %v1527_v49 }
 0x18b   :  { %1886 = vst [vmem:[#allocation9 + $0xd8] sm:$0xff] %v1466_v56  ;;  %1918 = vst [vmem:[#allocation9 + $0x1d8] sm:$0xff] %v1530_v57 }
 0x18c   :  { %2305 = vst [vmem:[#allocation8 + $0x68] sm:$0xff] %v2201_v58   ;;  %2321 = vst [vmem:[#allocation8 + $0xe8] sm:$0xff] %v2281_v59  }
 0x18d   :  { %v833_v60 = vpop.f32.mrb[56].mxu0  ;;  %v993_v61 = vpop.f32.mrb[56].mxu1 }
 0x18e   :  { %v835_v62 = vpop.f32.mrb[57].mxu0  ;;  %v995_v63 = vpop.f32.mrb[57].mxu1  ;;  %v1467_v4 = vadd.f32 %v2602_v55, %v833_v60  ;;  %v1531_v5 = vadd.f32 %v2602_v55, %v993_v61 }
 0x18f   :  { %v1468_v0 = vadd.f32 %v2600_v54, %v835_v62  ;;  %v1532_v1 = vadd.f32 %v2600_v54, %v995_v63  ;;  %v837_v2 = vpop.f32.mrb[58].mxu0  ;;  %v997_v3 = vpop.f32.mrb[58].mxu1 }
 0x190   :  { %v1469_v6 = vadd.f32 %v2602_v55, %v837_v2  ;;  %v1533_v7 = vadd.f32 %v2602_v55, %v997_v3  ;;  %v839_v8 = vpop.f32.mrb[59].mxu0  ;;  %v999_v9 = vpop.f32.mrb[59].mxu1 }
 0x191   :  { %1887 = vst [vmem:[#allocation9 + $0xe0] sm:$0xff] %v1468_v0  ;;  %1919 = vst [vmem:[#allocation9 + $0x1e0] sm:$0xff] %v1532_v1  ;;  %v1470_v10 = vadd.f32 %v2600_v54, %v839_v8  ;;  %v1534_v11 = vadd.f32 %v2600_v54, %v999_v9 }
 0x192   :  { %v2206_v12 = vpack.c.bf16 %v1469_v6, %v1467_v4  ;;  %v2286_v13 = vpack.c.bf16 %v1533_v7, %v1531_v5 }
 0x193   :  { %1888 = vst [vmem:[#allocation9 + $0xe8] sm:$0xff] %v1470_v10  ;;  %1920 = vst [vmem:[#allocation9 + $0x1e8] sm:$0xff] %v1534_v11 }
 0x194   :  { %2306 = vst [vmem:[#allocation8 + $0x70] sm:$0xff] %v2206_v12   ;;  %2322 = vst [vmem:[#allocation8 + $0xf0] sm:$0xff] %v2286_v13  }
 0x195   :  { %v843_v14 = vpop.f32.mrb[60].mxu0  ;;  %v1003_v15 = vpop.f32.mrb[60].mxu1 }
 0x196   :  { %v845_v16 = vpop.f32.mrb[61].mxu0  ;;  %v1005_v17 = vpop.f32.mrb[61].mxu1  ;;  %v1471_v22 = vadd.f32 %v2602_v55, %v843_v14  ;;  %v1535_v23 = vadd.f32 %v2602_v55, %v1003_v15 }
 0x197   :  { %v1472_v18 = vadd.f32 %v2600_v54, %v845_v16  ;;  %v1536_v19 = vadd.f32 %v2600_v54, %v1005_v17  ;;  %v847_v20 = vpop.f32.mrb[62].mxu0  ;;  %v1007_v21 = vpop.f32.mrb[62].mxu1 }
 0x198   :  { %v1473_v24 = vadd.f32 %v2602_v55, %v847_v20  ;;  %v1537_v25 = vadd.f32 %v2602_v55, %v1007_v21  ;;  %v849_v26 = vpop.f32.mrb[63].mxu0  ;;  %v1009_v27 = vpop.f32.mrb[63].mxu1 }
 0x199   :  { %1889 = vst [vmem:[#allocation9 + $0xf0] sm:$0xff] %v1472_v18  ;;  %1921 = vst [vmem:[#allocation9 + $0x1f0] sm:$0xff] %v1536_v19  ;;  %v1474_v28 = vadd.f32 %v2600_v54, %v849_v26  ;;  %v1538_v29 = vadd.f32 %v2600_v54, %v1009_v27 }
 0x19a   :  { %v2211_v30 = vpack.c.bf16 %v1473_v24, %v1471_v22  ;;  %v2291_v31 = vpack.c.bf16 %v1537_v25, %v1535_v23 }
 0x19b   :  { %1890 = vst [vmem:[#allocation9 + $0xf8] sm:$0xff] %v1474_v28  ;;  %1922 = vst [vmem:[#allocation9 + $0x1f8] sm:$0xff] %v1538_v29 }
 0x19c   :  { %2307 = vst [vmem:[#allocation8 + $0x78] sm:$0xff] %v2211_v30   ;;  %2323 = vst [vmem:[#allocation8 + $0xf8] sm:$0xff] %v2291_v31  }
 0x19d   :  { %2460 = shalt.err (!%p2457_p6)
}
 0x19e   :  { %s2461_s23 = scalar_lea.hbm %s2773_s4, 8192 }
 0x19f   :  { %p2462_p7 = scmp.ne.s32.totalorder %s2773_s4, %s2461_s23  ;;  %p2465_p8 = scmp.lt.u32.totalorder %s2461_s23, %s2773_s4 }
 0x1a1   :  { %p2467_p9 = pnand %p2465_p8, %p2462_p7 }
 0x1a3   :  { %2470 = shalt.err (!%p2467_p9)
}
 0x1a4   :  { %1946 = dma.vmem_to_hbm [thread:$0]  %s1941_s17, 8192, %s2773_s4, [#allocation10], %s2505_s0, %s2505_s0, %s2506_s13  }
 0x1a5   :  { %s2471_s6 = scalar_lea.vmem %s2732_s19, 4096  ;;  %p2476_p11 = scmp.lt.s32.totalorder %s2732_s19, %s2732_s19 }
 0x1a6   :  { %p2472_p10 = scmp.ne.s32.totalorder %s2732_s19, %s2471_s6  ;;  %p2477_p12 = scmp.lt.s32.totalorder %s2471_s6, %s2471_s6 }
 0x1a8   :  { %p2478_p13 = por %p2477_p12, %p2476_p11 }
 0x1aa   :  { %p2479_p0 = pnand %p2478_p13, %p2472_p10 }
 0x1ac   :  { %2482 = shalt.err (!%p2479_p0)
}
 0x1ad   :  { %s2483_s9 = scalar_lea.hbm %s2772_s3, 4096 }
 0x1ae   :  { %p2484_p1 = scmp.ne.s32.totalorder %s2772_s3, %s2483_s9  ;;  %p2487_p2 = scmp.lt.u32.totalorder %s2483_s9, %s2772_s3 }
 0x1b0   :  { %p2489_p3 = pnand %p2487_p2, %p2484_p1 }
 0x1b2   :  { %2492 = shalt.err (!%p2489_p3)
}
 0x1b3   :  { %1934 = dma.vmem_to_hbm [thread:$0]  %s2732_s19, 4096, %s2772_s3, [#allocation5], %s2502_s25, %s2502_s25, %s2503_s26  }
 0x1b4   :  { %2497 = dma.done.wait [#allocation5], 4096  }
 0x1b5   :  { %2498 = vsyncadd [#allocation5], 4294963200 }
 0x1b6   :  { %2499 = dma.done.wait [#allocation10], 8192  }
 0x1b7   :  { %2500 = vsyncadd [#allocation10], 4294959104 }
 0x1b8   :  { %1953 = vsyncpa [#allocation4], 1 }
 0x1b9   :  { %1954 = vsyncpa [#allocation7], 1 }
 0x1ba   :  { %1955 = vsyncpa [#allocation5], 1 }
 0x1bb   :  { %1956 = vsyncpa [#allocation10], 1 }

</bundles_post_ra>
